<compile_context>
chip_gen: v7x
topology: tpu7x:2x2x1
jax: 0.10.0
libtpu: 0.0.40
codegen_flags: <defaults>
</compile_context>

<pallas_src>
import math
import functools

import numpy as np
import jax
import jax.numpy as jnp
from jax import lax
from jax.experimental import pallas as pl
from jax.experimental.pallas import tpu as pltpu


# --------------------------------- Kernel ------------------------------------

def _mha_kernel(*refs, num_heads, d_k, dk_pad, self_attn, kv_fused):
    if self_attn:
        (x_ref, mask_ref, w_ref, b_ref, wo_ref, bo_ref, out_ref, attn_ref) = refs
    elif kv_fused:
        (x_ref, kv_ref, mask_ref, w_ref, b_ref, wo_ref, bo_ref, out_ref, attn_ref) = refs
    else:
        (x_ref, k_ref, v_ref, mask_ref, w_ref, b_ref, wo_ref, bo_ref,
         out_ref, attn_ref) = refs

    f32, bf16 = jnp.float32, jnp.bfloat16
    HP = num_heads * dk_pad                      # padded per-head width * heads

    w = w_ref[...]                               # (D, 3*HP) bf16 = [Wq_pad | Wk_pad | Wv_pad]
    b = b_ref[...]                               # (1, 3*HP) f32 (zero in pad lanes)
    xq = x_ref[...].astype(bf16)                 # (Mq, D)

    if self_attn:
        # One fused (Mq, D) x (D, 3*HP) bf16 matmul for Q, K and V (f32 accumulate).
        qkv = jnp.dot(xq, w, preferred_element_type=f32) + b
        Q, K, V = qkv[:, :HP], qkv[:, HP:2 * HP], qkv[:, 2 * HP:]
    elif kv_fused:
        # value is key: fuse the K and V projections into one matmul.
        Q = jnp.dot(xq, w[:, :HP], preferred_element_type=f32) + b[:, :HP]
        xkv = kv_ref[...].astype(bf16)
        kv = jnp.dot(xkv, w[:, HP:], preferred_element_type=f32) + b[:, HP:]
        K, V = kv[:, :HP], kv[:, HP:]
    else:
        Q = jnp.dot(xq, w[:, :HP], preferred_element_type=f32) + b[:, :HP]
        K = (jnp.dot(k_ref[...].astype(bf16), w[:, HP:2 * HP],
                     preferred_element_type=f32) + b[:, HP:2 * HP])
        V = (jnp.dot(v_ref[...].astype(bf16), w[:, 2 * HP:],
                     preferred_element_type=f32) + b[:, 2 * HP:])

    mask = mask_ref[...]                         # (Mq, Mk) f32: 0 inside batch, -1e30 across
    wo = wo_ref[...]                             # (HP, D) bf16, zero rows in pad positions
    scale = 1.0 / math.sqrt(d_k)

    out_acc = jnp.zeros(out_ref.shape, f32)
    # TODO(synk): static head loop is fine for small H; at H>=16 switch to
    #             lax.fori_loop / flash-style restructure to bound live ranges.
    for h in range(num_heads):
        off = h * dk_pad                         # 128-lane aligned slice start
        qh = Q[:, off:off + dk_pad].astype(bf16)
        kh = K[:, off:off + dk_pad].astype(bf16)
        vh = V[:, off:off + dk_pad].astype(bf16)

        s = lax.dot_general(qh, kh, (((1,), (1,)), ((), ())),
                            preferred_element_type=f32) * scale + mask   # (Mq, Mk)
        m = jnp.max(s, axis=-1, keepdims=True)
        e = jnp.exp(s - m)
        p = e * pl.reciprocal(jnp.sum(e, axis=-1, keepdims=True), approx=True)
        # Dropout on p is identity in eval mode.

        ctx = jnp.dot(p.astype(bf16), vh, preferred_element_type=f32)    # (Mq, dk_pad)
        # Second module output = concatenated per-head context (pre-W_o).
        attn_ref[:, h * d_k:(h + 1) * d_k] = ctx[:, :d_k]
        # Output projection accumulated per head (replaces lane concat with MXU adds).
        out_acc = out_acc + jnp.dot(ctx.astype(bf16), wo[off:off + dk_pad, :],
                                    preferred_element_type=f32)

    out_ref[...] = out_acc + bo_ref[...]


# -------------------------------- Wrapper -------------------------------------

def _full_spec(shape):
    n = len(shape)
    return pl.BlockSpec(shape, lambda i, n=n: (0,) * n)


def multi_head_attention(kparams, query, key=None, value=None, *, num_heads):
    """Pallas forward of MultiHeadAttention.

    key=value=None  -> self-attention (single fused QKV matmul).
    value=None      -> cross-attention with value=key (fused KV matmul).
    Returns (out, attn) exactly like the PyTorch module (attn = pre-W_o context).
    """
    self_attn = key is None and value is None
    kv_fused = (not self_attn) and (value is None)
    if key is None:
        key = query
    if value is None:
        value = key

    B, Tq, D = query.shape
    Tk = key.shape[1]
    assert D % num_heads == 0
    d_k = D // num_heads
    HP = kparams["w_qkv"].shape[1] // 3
    dk_pad = HP // num_heads

    Mq, Mk = B * Tq, B * Tk
    q2 = query.reshape(Mq, D).astype(jnp.float32)
    k2 = key.reshape(Mk, D).astype(jnp.float32)
    v2 = value.reshape(Mk, D).astype(jnp.float32)

    # Block-diagonal additive bias so the flattened-batch softmax never mixes batches.
    qb = np.repeat(np.arange(B), Tq)
    kb = np.repeat(np.arange(B), Tk)
    mask = jnp.asarray(np.where(qb[:, None] == kb[None, :], 0.0, -1e30),
                       dtype=jnp.float32)

    w_qkv, b_qkv = kparams["w_qkv"], kparams["b_qkv"]
    w_o, b_o = kparams["w_o"], kparams["b_o"]

    if self_attn:
        args = (q2, mask, w_qkv, b_qkv, w_o, b_o)
    elif kv_fused:
        args = (q2, k2, mask, w_qkv, b_qkv, w_o, b_o)
    else:
        args = (q2, k2, v2, mask, w_qkv, b_qkv, w_o, b_o)

    kernel = functools.partial(_mha_kernel, num_heads=num_heads, d_k=d_k,
                               dk_pad=dk_pad, self_attn=self_attn, kv_fused=kv_fused)

    # Single grid step: whole (tiny) batch handled in one invocation.
    # (On v7x one could row-split the flattened Mq rows over grid=(2,) "parallel"
    #  so both TensorCores get a tile; at these shapes a single step is fastest.)
    out2, attn2 = pl.pallas_call(
        kernel,
        out_shape=(jax.ShapeDtypeStruct((Mq, D), jnp.float32),
                   jax.ShapeDtypeStruct((Mq, D), jnp.float32)),
        grid=(1,),
        in_specs=[_full_spec(a.shape) for a in args],
        out_specs=(_full_spec((Mq, D)), _full_spec((Mq, D))),
        compiler_params=pltpu.CompilerParams(
            dimension_semantics=("arbitrary",),
            vmem_limit_bytes=8 * 1024 * 1024),       # working set << 1 MiB
    )(*args)
    return out2.reshape(B, Tq, D), attn2.reshape(B, Tq, D)


# --------------------------- Params, packing & reference -----------------------

def init_mha_params(key, embedding_dim, num_heads):
    """PyTorch nn.Linear default init, PyTorch (out_features, in_features) layout."""
    D = embedding_dim
    assert D % num_heads == 0
    ks = jax.random.split(key, 8)
    bound = 1.0 / math.sqrt(D)

    def u(k, shape):
        return jax.random.uniform(k, shape, jnp.float32, -bound, bound)

    return {
        "wq": u(ks[0], (D, D)), "wk": u(ks[1], (D, D)),
        "wv": u(ks[2], (D, D)), "wo": u(ks[3], (D, D)),
        "bq": u(ks[4], (D,)), "bk": u(ks[5], (D,)),
        "bv": u(ks[6], (D,)), "bo": u(ks[7], (D,)),
    }


def pack_params_for_kernel(params, num_heads):
    """One-time pack: transpose to (in, out), pad each head's d_k columns to a 128-lane
    boundary (zero pad lanes contribute exactly 0), concatenate Q|K|V, cast to bf16."""
    D = params["wq"].shape[0]
    d_k = D // num_heads
    dk_pad = ((d_k + 127) // 128) * 128
    HP = num_heads * dk_pad

    def pad_proj(w, b):
        wt = w.T                                     # (D_in, D_out) ready for x @ wt
        w_pad = jnp.zeros((D, HP), jnp.float32)
        b_pad = jnp.zeros((HP,), jnp.float32)
        for h in range(num_heads):
            w_pad = w_pad.at[:, h * dk_pad:h * dk_pad + d_k].set(
                wt[:, h * d_k:(h + 1) * d_k])
            b_pad = b_pad.at[h * dk_pad:h * dk_pad + d_k].set(
                b[h * d_k:(h + 1) * d_k])
        return w_pad, b_pad

    wq_p, bq_p = pad_proj(params["wq"], params["bq"])
    wk_p, bk_p = pad_proj(params["wk"], params["bk"])
    wv_p, bv_p = pad_proj(params["wv"], params["bv"])

    wo_t = params["wo"].T                            # (D_in, D_out) for attn @ wo_t
    wo_pad = jnp.zeros((HP, D), jnp.float32)
    for h in range(num_heads):
        wo_pad = wo_pad.at[h * dk_pad:h * dk_pad + d_k, :].set(
            wo_t[h * d_k:(h + 1) * d_k, :])

    return {
        "w_qkv": jnp.concatenate([wq_p, wk_p, wv_p], axis=1).astype(jnp.bfloat16),
        "b_qkv": jnp.concatenate([bq_p, bk_p, bv_p]).reshape(1, 3 * HP),   # f32
        "w_o": wo_pad.astype(jnp.bfloat16),
        "b_o": params["bo"].reshape(1, D),                                  # f32
    }


def mha_reference(params, query, key, value, num_heads):
    """Plain-JAX f32 reference mirroring the PyTorch module (eval mode, mask=None)."""
    B, Tq, D = query.shape
    Tk = key.shape[1]
    d_k = D // num_heads

    def lin(x, w, b):
        return x @ w.T + b

    q = lin(query, params["wq"], params["bq"]).reshape(B, Tq, num_heads, d_k).transpose(0, 2, 1, 3)
    k = lin(key, params["wk"], params["bk"]).reshape(B, Tk, num_heads, d_k).transpose(0, 2, 1, 3)
    v = lin(value, params["wv"], params["bv"]).reshape(B, Tk, num_heads, d_k).transpose(0, 2, 1, 3)
    s = jnp.einsum("bhqd,bhkd->bhqk", q, k) / math.sqrt(d_k)
    p = jax.nn.softmax(s, axis=-1)
    ctx = jnp.einsum("bhqk,bhkd->bhqd", p, v)
    attn = ctx.transpose(0, 2, 1, 3).reshape(B, Tq, D)
    out = lin(attn, params["wo"], params["bo"])
    return out, attn


# ----------------------------------- Main --------------------------------------

if __name__ == "__main__":
    B, T, D, H = 2, 8, 32, 4                     # batch, seq, embedding_dim, heads (d_k=8)
    root = jax.random.PRNGKey(0)
    kx, kk, kvv, kp = jax.random.split(root, 4)
    x = jax.random.normal(kx, (B, T, D), jnp.float32)
    mem = jax.random.normal(kk, (B, T, D), jnp.float32)
    val = jax.random.normal(kvv, (B, T, D), jnp.float32)

    params = init_mha_params(kp, D, H)           # torch-layout f32 params (reference)
    kparams = pack_params_for_kernel(params, H)  # padded / bf16 kernel params (once)

    fwd = jax.jit(functools.partial(multi_head_attention, num_heads=H))
    RTOL, ATOL = 2e-2, 5e-3                      # bf16-MXU + approx-reciprocal tolerance

    # 1) Self-attention path (single fused QKV matmul).
    out, attn = fwd(kparams, x)
    jax.block_until_ready((out, attn))
    ref_out, ref_attn = mha_reference(params, x, x, x, H)
    assert out.shape == (B, T, D) and attn.shape == (B, T, D)
    assert bool(jnp.all(jnp.isfinite(out))) and bool(jnp.all(jnp.isfinite(attn)))
    assert jnp.allclose(out, ref_out, rtol=RTOL, atol=ATOL), \
        float(jnp.max(jnp.abs(out - ref_out)))
    assert jnp.allclose(attn, ref_attn, rtol=RTOL, atol=ATOL), \
        float(jnp.max(jnp.abs(attn - ref_attn)))

    # 2) Cross-attention with value = key (fused KV projection).
    out2, attn2 = fwd(kparams, x, mem)
    jax.block_until_ready((out2, attn2))
    ref_out2, ref_attn2 = mha_reference(params, x, mem, mem, H)
    assert jnp.allclose(out2, ref_out2, rtol=RTOL, atol=ATOL), \
        float(jnp.max(jnp.abs(out2 - ref_out2)))
    assert jnp.allclose(attn2, ref_attn2, rtol=RTOL, atol=ATOL), \
        float(jnp.max(jnp.abs(attn2 - ref_attn2)))

    # 3) Fully general path (distinct key / value).
    out3, attn3 = fwd(kparams, x, mem, val)
    jax.block_until_ready((out3, attn3))
    ref_out3, ref_attn3 = mha_reference(params, x, mem, val, H)
    assert jnp.allclose(out3, ref_out3, rtol=RTOL, atol=ATOL), \
        float(jnp.max(jnp.abs(out3 - ref_out3)))
    assert jnp.allclose(attn3, ref_attn3, rtol=RTOL, atol=ATOL), \
        float(jnp.max(jnp.abs(attn3 - ref_attn3)))

    print("KERNEL_OK")
</pallas_src>

<mosaic_0001>
module attributes {stable_mosaic.version = 11 : i64} {
  func.func @_mha_kernel(%arg0: i32, %arg1: memref<16x32xf32, #tpu.memory_space<vmem>>, %arg2: memref<16x16xf32, #tpu.memory_space<vmem>>, %arg3: memref<32x1536xbf16, #tpu.memory_space<vmem>>, %arg4: memref<1x1536xf32, #tpu.memory_space<vmem>>, %arg5: memref<512x32xbf16, #tpu.memory_space<vmem>>, %arg6: memref<1x32xf32, #tpu.memory_space<vmem>>, %arg7: memref<16x32xf32, #tpu.memory_space<vmem>>, %arg8: memref<16x32xf32, #tpu.memory_space<vmem>>) attributes {dimension_semantics = [#tpu.dimension_semantics<arbitrary>], iteration_bounds = array<i64: 1>, scalar_prefetch = 0 : i64, scratch_operands = 0 : i64, tpu.core_type = #tpu.core_type<tc>, window_params = [{pipeline_mode = #tpu.pipeline_mode<synchronous>, transform_indices = @transform_0, window_bounds = array<i64: 16, 32>}, {pipeline_mode = #tpu.pipeline_mode<synchronous>, transform_indices = @transform_1, window_bounds = array<i64: 16, 16>}, {pipeline_mode = #tpu.pipeline_mode<synchronous>, transform_indices = @transform_2, window_bounds = array<i64: 32, 1536>}, {pipeline_mode = #tpu.pipeline_mode<synchronous>, transform_indices = @transform_3, window_bounds = array<i64: 1, 1536>}, {pipeline_mode = #tpu.pipeline_mode<synchronous>, transform_indices = @transform_4, window_bounds = array<i64: 512, 32>}, {pipeline_mode = #tpu.pipeline_mode<synchronous>, transform_indices = @transform_5, window_bounds = array<i64: 1, 32>}, {pipeline_mode = #tpu.pipeline_mode<synchronous>, transform_indices = @transform_6, window_bounds = array<i64: 16, 32>}, {pipeline_mode = #tpu.pipeline_mode<synchronous>, transform_indices = @transform_7, window_bounds = array<i64: 16, 32>}]} {
    %c0 = arith.constant 0 : index
    %c0_0 = arith.constant 0 : index
    %0 = vector.load %arg3[%c0, %c0_0] : memref<32x1536xbf16, #tpu.memory_space<vmem>>, vector<32x1536xbf16>
    %c0_1 = arith.constant 0 : index
    %c0_2 = arith.constant 0 : index
    %1 = vector.load %arg4[%c0_1, %c0_2] : memref<1x1536xf32, #tpu.memory_space<vmem>>, vector<1x1536xf32>
    %c0_3 = arith.constant 0 : index
    %c0_4 = arith.constant 0 : index
    %2 = vector.load %arg1[%c0_3, %c0_4] : memref<16x32xf32, #tpu.memory_space<vmem>>, vector<16x32xf32>
    %3 = arith.truncf %2 : vector<16x32xf32> to vector<16x32xbf16>
    %cst = arith.constant dense<0.000000e+00> : vector<16x1536xf32>
    %4 = tpu.matmul %3, %0, %cst {dimension_numbers = #tpu.dot_dimension_numbers<[1], [0], [0], [1], [0, 0, 1, 1], [], []>} : vector<16x32xbf16>, vector<32x1536xbf16>, vector<16x1536xf32> -> vector<16x1536xf32>
    %5 = vector.broadcast %1 : vector<1x1536xf32> to vector<16x1536xf32>
    %6 = arith.addf %4, %5 : vector<16x1536xf32>
    %7 = vector.extract_strided_slice %6 {offsets = [0, 0], sizes = [16, 512], strides = [1, 1]} : vector<16x1536xf32> to vector<16x512xf32>
    %8 = vector.extract_strided_slice %6 {offsets = [0, 512], sizes = [16, 512], strides = [1, 1]} : vector<16x1536xf32> to vector<16x512xf32>
    %9 = vector.extract_strided_slice %6 {offsets = [0, 1024], sizes = [16, 512], strides = [1, 1]} : vector<16x1536xf32> to vector<16x512xf32>
    %c0_5 = arith.constant 0 : index
    %c0_6 = arith.constant 0 : index
    %10 = vector.load %arg2[%c0_5, %c0_6] : memref<16x16xf32, #tpu.memory_space<vmem>>, vector<16x16xf32>
    %c0_7 = arith.constant 0 : index
    %c0_8 = arith.constant 0 : index
    %11 = vector.load %arg5[%c0_7, %c0_8] : memref<512x32xbf16, #tpu.memory_space<vmem>>, vector<512x32xbf16>
    %cst_9 = arith.constant 0.000000e+00 : f32
    %12 = vector.broadcast %cst_9 : f32 to vector<16x32xf32>
    %13 = vector.extract_strided_slice %7 {offsets = [0, 0], sizes = [16, 128], strides = [1, 1]} : vector<16x512xf32> to vector<16x128xf32>
    %14 = arith.truncf %13 : vector<16x128xf32> to vector<16x128xbf16>
    %15 = vector.extract_strided_slice %8 {offsets = [0, 0], sizes = [16, 128], strides = [1, 1]} : vector<16x512xf32> to vector<16x128xf32>
    %16 = arith.truncf %15 : vector<16x128xf32> to vector<16x128xbf16>
    %17 = vector.extract_strided_slice %9 {offsets = [0, 0], sizes = [16, 128], strides = [1, 1]} : vector<16x512xf32> to vector<16x128xf32>
    %18 = arith.truncf %17 : vector<16x128xf32> to vector<16x128xbf16>
    %cst_10 = arith.constant dense<0.000000e+00> : vector<16x16xf32>
    %19 = tpu.matmul %14, %16, %cst_10 {dimension_numbers = #tpu.dot_dimension_numbers<[1], [1], [0], [0], [0, 0, 1, 0], [], []>} : vector<16x128xbf16>, vector<16x128xbf16>, vector<16x16xf32> -> vector<16x16xf32>
    %cst_11 = arith.constant 0.353553385 : f32
    %20 = vector.broadcast %cst_11 : f32 to vector<16x16xf32>
    %21 = arith.mulf %19, %20 : vector<16x16xf32>
    %22 = arith.addf %21, %10 : vector<16x16xf32>
    %cst_12 = arith.constant dense<0xFF800000> : vector<16xf32>
    %23 = vector.multi_reduction <maximumf>, %22, %cst_12 [1] : vector<16x16xf32> to vector<16xf32>
    %24 = vector.shape_cast %23 : vector<16xf32> to vector<16x1xf32>
    %25 = vector.broadcast %24 : vector<16x1xf32> to vector<16x16xf32>
    %26 = arith.subf %22, %25 : vector<16x16xf32>
    %27 = math.exp %26 : vector<16x16xf32>
    %cst_13 = arith.constant dense<0.000000e+00> : vector<16xf32>
    %28 = vector.multi_reduction <add>, %27, %cst_13 [1] : vector<16x16xf32> to vector<16xf32>
    %29 = vector.shape_cast %28 : vector<16xf32> to vector<16x1xf32>
    %30 = tpu.reciprocal %29 {approx = true} : vector<16x1xf32> -> vector<16x1xf32>
    %31 = vector.broadcast %30 : vector<16x1xf32> to vector<16x16xf32>
    %32 = arith.mulf %27, %31 : vector<16x16xf32>
    %33 = arith.truncf %32 : vector<16x16xf32> to vector<16x16xbf16>
    %cst_14 = arith.constant dense<0.000000e+00> : vector<16x128xf32>
    %34 = tpu.matmul %33, %18, %cst_14 {dimension_numbers = #tpu.dot_dimension_numbers<[1], [0], [0], [1], [0, 0, 1, 1], [], []>} : vector<16x16xbf16>, vector<16x128xbf16>, vector<16x128xf32> -> vector<16x128xf32>
    %35 = vector.extract_strided_slice %34 {offsets = [0, 0], sizes = [16, 8], strides = [1, 1]} : vector<16x128xf32> to vector<16x8xf32>
    %c0_15 = arith.constant 0 : index
    %c0_16 = arith.constant 0 : index
    %36 = vector.load %arg8[%c0_15, %c0_16] : memref<16x32xf32, #tpu.memory_space<vmem>>, vector<16x8xf32>
    tpu.vector_store %arg8[%c0_15, %c0_16], %35 {strides = array<i32>} : memref<16x32xf32, #tpu.memory_space<vmem>>, vector<16x8xf32>,
    %37 = arith.truncf %34 : vector<16x128xf32> to vector<16x128xbf16>
    %38 = vector.extract_strided_slice %11 {offsets = [0, 0], sizes = [128, 32], strides = [1, 1]} : vector<512x32xbf16> to vector<128x32xbf16>
    %cst_17 = arith.constant dense<0.000000e+00> : vector<16x32xf32>
    %39 = tpu.matmul %37, %38, %cst_17 {dimension_numbers = #tpu.dot_dimension_numbers<[1], [0], [0], [1], [0, 0, 1, 1], [], []>} : vector<16x128xbf16>, vector<128x32xbf16>, vector<16x32xf32> -> vector<16x32xf32>
    %40 = arith.addf %12, %39 : vector<16x32xf32>
    %41 = vector.extract_strided_slice %7 {offsets = [0, 128], sizes = [16, 128], strides = [1, 1]} : vector<16x512xf32> to vector<16x128xf32>
    %42 = arith.truncf %41 : vector<16x128xf32> to vector<16x128xbf16>
    %43 = vector.extract_strided_slice %8 {offsets = [0, 128], sizes = [16, 128], strides = [1, 1]} : vector<16x512xf32> to vector<16x128xf32>
    %44 = arith.truncf %43 : vector<16x128xf32> to vector<16x128xbf16>
    %45 = vector.extract_strided_slice %9 {offsets = [0, 128], sizes = [16, 128], strides = [1, 1]} : vector<16x512xf32> to vector<16x128xf32>
    %46 = arith.truncf %45 : vector<16x128xf32> to vector<16x128xbf16>
    %cst_18 = arith.constant dense<0.000000e+00> : vector<16x16xf32>
    %47 = tpu.matmul %42, %44, %cst_18 {dimension_numbers = #tpu.dot_dimension_numbers<[1], [1], [0], [0], [0, 0, 1, 0], [], []>} : vector<16x128xbf16>, vector<16x128xbf16>, vector<16x16xf32> -> vector<16x16xf32>
    %cst_19 = arith.constant 0.353553385 : f32
    %48 = vector.broadcast %cst_19 : f32 to vector<16x16xf32>
    %49 = arith.mulf %47, %48 : vector<16x16xf32>
    %50 = arith.addf %49, %10 : vector<16x16xf32>
    %cst_20 = arith.constant dense<0xFF800000> : vector<16xf32>
    %51 = vector.multi_reduction <maximumf>, %50, %cst_20 [1] : vector<16x16xf32> to vector<16xf32>
    %52 = vector.shape_cast %51 : vector<16xf32> to vector<16x1xf32>
    %53 = vector.broadcast %52 : vector<16x1xf32> to vector<16x16xf32>
    %54 = arith.subf %50, %53 : vector<16x16xf32>
    %55 = math.exp %54 : vector<16x16xf32>
    %cst_21 = arith.constant dense<0.000000e+00> : vector<16xf32>
    %56 = vector.multi_reduction <add>, %55, %cst_21 [1] : vector<16x16xf32> to vector<16xf32>
    %57 = vector.shape_cast %56 : vector<16xf32> to vector<16x1xf32>
    %58 = tpu.reciprocal %57 {approx = true} : vector<16x1xf32> -> vector<16x1xf32>
    %59 = vector.broadcast %58 : vector<16x1xf32> to vector<16x16xf32>
    %60 = arith.mulf %55, %59 : vector<16x16xf32>
    %61 = arith.truncf %60 : vector<16x16xf32> to vector<16x16xbf16>
    %cst_22 = arith.constant dense<0.000000e+00> : vector<16x128xf32>
    %62 = tpu.matmul %61, %46, %cst_22 {dimension_numbers = #tpu.dot_dimension_numbers<[1], [0], [0], [1], [0, 0, 1, 1], [], []>} : vector<16x16xbf16>, vector<16x128xbf16>, vector<16x128xf32> -> vector<16x128xf32>
    %63 = vector.extract_strided_slice %62 {offsets = [0, 0], sizes = [16, 8], strides = [1, 1]} : vector<16x128xf32> to vector<16x8xf32>
    %c0_23 = arith.constant 0 : index
    %c8 = arith.constant 8 : index
    %64 = vector.load %arg8[%c0_23, %c8] : memref<16x32xf32, #tpu.memory_space<vmem>>, vector<16x8xf32>
    tpu.vector_store %arg8[%c0_23, %c8], %63 {strides = array<i32>} : memref<16x32xf32, #tpu.memory_space<vmem>>, vector<16x8xf32>,
    %65 = arith.truncf %62 : vector<16x128xf32> to vector<16x128xbf16>
    %66 = vector.extract_strided_slice %11 {offsets = [128, 0], sizes = [128, 32], strides = [1, 1]} : vector<512x32xbf16> to vector<128x32xbf16>
    %cst_24 = arith.constant dense<0.000000e+00> : vector<16x32xf32>
    %67 = tpu.matmul %65, %66, %cst_24 {dimension_numbers = #tpu.dot_dimension_numbers<[1], [0], [0], [1], [0, 0, 1, 1], [], []>} : vector<16x128xbf16>, vector<128x32xbf16>, vector<16x32xf32> -> vector<16x32xf32>
    %68 = arith.addf %40, %67 : vector<16x32xf32>
    %69 = vector.extract_strided_slice %7 {offsets = [0, 256], sizes = [16, 128], strides = [1, 1]} : vector<16x512xf32> to vector<16x128xf32>
    %70 = arith.truncf %69 : vector<16x128xf32> to vector<16x128xbf16>
    %71 = vector.extract_strided_slice %8 {offsets = [0, 256], sizes = [16, 128], strides = [1, 1]} : vector<16x512xf32> to vector<16x128xf32>
    %72 = arith.truncf %71 : vector<16x128xf32> to vector<16x128xbf16>
    %73 = vector.extract_strided_slice %9 {offsets = [0, 256], sizes = [16, 128], strides = [1, 1]} : vector<16x512xf32> to vector<16x128xf32>
    %74 = arith.truncf %73 : vector<16x128xf32> to vector<16x128xbf16>
    %cst_25 = arith.constant dense<0.000000e+00> : vector<16x16xf32>
    %75 = tpu.matmul %70, %72, %cst_25 {dimension_numbers = #tpu.dot_dimension_numbers<[1], [1], [0], [0], [0, 0, 1, 0], [], []>} : vector<16x128xbf16>, vector<16x128xbf16>, vector<16x16xf32> -> vector<16x16xf32>
    %cst_26 = arith.constant 0.353553385 : f32
    %76 = vector.broadcast %cst_26 : f32 to vector<16x16xf32>
    %77 = arith.mulf %75, %76 : vector<16x16xf32>
    %78 = arith.addf %77, %10 : vector<16x16xf32>
    %cst_27 = arith.constant dense<0xFF800000> : vector<16xf32>
    %79 = vector.multi_reduction <maximumf>, %78, %cst_27 [1] : vector<16x16xf32> to vector<16xf32>
    %80 = vector.shape_cast %79 : vector<16xf32> to vector<16x1xf32>
    %81 = vector.broadcast %80 : vector<16x1xf32> to vector<16x16xf32>
    %82 = arith.subf %78, %81 : vector<16x16xf32>
    %83 = math.exp %82 : vector<16x16xf32>
    %cst_28 = arith.constant dense<0.000000e+00> : vector<16xf32>
    %84 = vector.multi_reduction <add>, %83, %cst_28 [1] : vector<16x16xf32> to vector<16xf32>
    %85 = vector.shape_cast %84 : vector<16xf32> to vector<16x1xf32>
    %86 = tpu.reciprocal %85 {approx = true} : vector<16x1xf32> -> vector<16x1xf32>
    %87 = vector.broadcast %86 : vector<16x1xf32> to vector<16x16xf32>
    %88 = arith.mulf %83, %87 : vector<16x16xf32>
    %89 = arith.truncf %88 : vector<16x16xf32> to vector<16x16xbf16>
    %cst_29 = arith.constant dense<0.000000e+00> : vector<16x128xf32>
    %90 = tpu.matmul %89, %74, %cst_29 {dimension_numbers = #tpu.dot_dimension_numbers<[1], [0], [0], [1], [0, 0, 1, 1], [], []>} : vector<16x16xbf16>, vector<16x128xbf16>, vector<16x128xf32> -> vector<16x128xf32>
    %91 = vector.extract_strided_slice %90 {offsets = [0, 0], sizes = [16, 8], strides = [1, 1]} : vector<16x128xf32> to vector<16x8xf32>
    %c0_30 = arith.constant 0 : index
    %c16 = arith.constant 16 : index
    %92 = vector.load %arg8[%c0_30, %c16] : memref<16x32xf32, #tpu.memory_space<vmem>>, vector<16x8xf32>
    tpu.vector_store %arg8[%c0_30, %c16], %91 {strides = array<i32>} : memref<16x32xf32, #tpu.memory_space<vmem>>, vector<16x8xf32>,
    %93 = arith.truncf %90 : vector<16x128xf32> to vector<16x128xbf16>
    %94 = vector.extract_strided_slice %11 {offsets = [256, 0], sizes = [128, 32], strides = [1, 1]} : vector<512x32xbf16> to vector<128x32xbf16>
    %cst_31 = arith.constant dense<0.000000e+00> : vector<16x32xf32>
    %95 = tpu.matmul %93, %94, %cst_31 {dimension_numbers = #tpu.dot_dimension_numbers<[1], [0], [0], [1], [0, 0, 1, 1], [], []>} : vector<16x128xbf16>, vector<128x32xbf16>, vector<16x32xf32> -> vector<16x32xf32>
    %96 = arith.addf %68, %95 : vector<16x32xf32>
    %97 = vector.extract_strided_slice %7 {offsets = [0, 384], sizes = [16, 128], strides = [1, 1]} : vector<16x512xf32> to vector<16x128xf32>
    %98 = arith.truncf %97 : vector<16x128xf32> to vector<16x128xbf16>
    %99 = vector.extract_strided_slice %8 {offsets = [0, 384], sizes = [16, 128], strides = [1, 1]} : vector<16x512xf32> to vector<16x128xf32>
    %100 = arith.truncf %99 : vector<16x128xf32> to vector<16x128xbf16>
    %101 = vector.extract_strided_slice %9 {offsets = [0, 384], sizes = [16, 128], strides = [1, 1]} : vector<16x512xf32> to vector<16x128xf32>
    %102 = arith.truncf %101 : vector<16x128xf32> to vector<16x128xbf16>
    %cst_32 = arith.constant dense<0.000000e+00> : vector<16x16xf32>
    %103 = tpu.matmul %98, %100, %cst_32 {dimension_numbers = #tpu.dot_dimension_numbers<[1], [1], [0], [0], [0, 0, 1, 0], [], []>} : vector<16x128xbf16>, vector<16x128xbf16>, vector<16x16xf32> -> vector<16x16xf32>
    %cst_33 = arith.constant 0.353553385 : f32
    %104 = vector.broadcast %cst_33 : f32 to vector<16x16xf32>
    %105 = arith.mulf %103, %104 : vector<16x16xf32>
    %106 = arith.addf %105, %10 : vector<16x16xf32>
    %cst_34 = arith.constant dense<0xFF800000> : vector<16xf32>
    %107 = vector.multi_reduction <maximumf>, %106, %cst_34 [1] : vector<16x16xf32> to vector<16xf32>
    %108 = vector.shape_cast %107 : vector<16xf32> to vector<16x1xf32>
    %109 = vector.broadcast %108 : vector<16x1xf32> to vector<16x16xf32>
    %110 = arith.subf %106, %109 : vector<16x16xf32>
    %111 = math.exp %110 : vector<16x16xf32>
    %cst_35 = arith.constant dense<0.000000e+00> : vector<16xf32>
    %112 = vector.multi_reduction <add>, %111, %cst_35 [1] : vector<16x16xf32> to vector<16xf32>
    %113 = vector.shape_cast %112 : vector<16xf32> to vector<16x1xf32>
    %114 = tpu.reciprocal %113 {approx = true} : vector<16x1xf32> -> vector<16x1xf32>
    %115 = vector.broadcast %114 : vector<16x1xf32> to vector<16x16xf32>
    %116 = arith.mulf %111, %115 : vector<16x16xf32>
    %117 = arith.truncf %116 : vector<16x16xf32> to vector<16x16xbf16>
    %cst_36 = arith.constant dense<0.000000e+00> : vector<16x128xf32>
    %118 = tpu.matmul %117, %102, %cst_36 {dimension_numbers = #tpu.dot_dimension_numbers<[1], [0], [0], [1], [0, 0, 1, 1], [], []>} : vector<16x16xbf16>, vector<16x128xbf16>, vector<16x128xf32> -> vector<16x128xf32>
    %119 = vector.extract_strided_slice %118 {offsets = [0, 0], sizes = [16, 8], strides = [1, 1]} : vector<16x128xf32> to vector<16x8xf32>
    %c0_37 = arith.constant 0 : index
    %c24 = arith.constant 24 : index
    %120 = vector.load %arg8[%c0_37, %c24] : memref<16x32xf32, #tpu.memory_space<vmem>>, vector<16x8xf32>
    tpu.vector_store %arg8[%c0_37, %c24], %119 {strides = array<i32>} : memref<16x32xf32, #tpu.memory_space<vmem>>, vector<16x8xf32>,
    %121 = arith.truncf %118 : vector<16x128xf32> to vector<16x128xbf16>
    %122 = vector.extract_strided_slice %11 {offsets = [384, 0], sizes = [128, 32], strides = [1, 1]} : vector<512x32xbf16> to vector<128x32xbf16>
    %cst_38 = arith.constant dense<0.000000e+00> : vector<16x32xf32>
    %123 = tpu.matmul %121, %122, %cst_38 {dimension_numbers = #tpu.dot_dimension_numbers<[1], [0], [0], [1], [0, 0, 1, 1], [], []>} : vector<16x128xbf16>, vector<128x32xbf16>, vector<16x32xf32> -> vector<16x32xf32>
    %124 = arith.addf %96, %123 : vector<16x32xf32>
    %c0_39 = arith.constant 0 : index
    %c0_40 = arith.constant 0 : index
    %125 = vector.load %arg6[%c0_39, %c0_40] : memref<1x32xf32, #tpu.memory_space<vmem>>, vector<1x32xf32>
    %126 = vector.broadcast %125 : vector<1x32xf32> to vector<16x32xf32>
    %127 = arith.addf %124, %126 : vector<16x32xf32>
    %c0_41 = arith.constant 0 : index
    %c0_42 = arith.constant 0 : index
    %128 = vector.load %arg7[%c0_41, %c0_42] : memref<16x32xf32, #tpu.memory_space<vmem>>, vector<16x32xf32>
    tpu.vector_store %arg7[%c0_41, %c0_42], %127 {strides = array<i32>} : memref<16x32xf32, #tpu.memory_space<vmem>>, vector<16x32xf32>,
    return
  }
  func.func @transform_0(%arg0: i32) -> (i32, i32) {
    %c0_i32 = arith.constant 0 : i32
    %c0_i32_0 = arith.constant 0 : i32
    %c0_i32_1 = arith.constant 0 : i32
    return %c0_i32, %c0_i32_0 : i32, i32
  }
  func.func @transform_1(%arg0: i32) -> (i32, i32) {
    %c0_i32 = arith.constant 0 : i32
    %c0_i32_0 = arith.constant 0 : i32
    %c0_i32_1 = arith.constant 0 : i32
    return %c0_i32, %c0_i32_0 : i32, i32
  }
  func.func @transform_2(%arg0: i32) -> (i32, i32) {
    %c0_i32 = arith.constant 0 : i32
    %c0_i32_0 = arith.constant 0 : i32
    %c0_i32_1 = arith.constant 0 : i32
    return %c0_i32, %c0_i32_0 : i32, i32
  }
  func.func @transform_3(%arg0: i32) -> (i32, i32) {
    %c0_i32 = arith.constant 0 : i32
    %c0_i32_0 = arith.constant 0 : i32
    %c0_i32_1 = arith.constant 0 : i32
    return %c0_i32, %c0_i32_0 : i32, i32
  }
  func.func @transform_4(%arg0: i32) -> (i32, i32) {
    %c0_i32 = arith.constant 0 : i32
    %c0_i32_0 = arith.constant 0 : i32
    %c0_i32_1 = arith.constant 0 : i32
    return %c0_i32, %c0_i32_0 : i32, i32
  }
  func.func @transform_5(%arg0: i32) -> (i32, i32) {
    %c0_i32 = arith.constant 0 : i32
    %c0_i32_0 = arith.constant 0 : i32
    %c0_i32_1 = arith.constant 0 : i32
    return %c0_i32, %c0_i32_0 : i32, i32
  }
  func.func @transform_6(%arg0: i32) -> (i32, i32) {
    %c0_i32 = arith.constant 0 : i32
    %c0_i32_0 = arith.constant 0 : i32
    %c0_i32_1 = arith.constant 0 : i32
    return %c0_i32, %c0_i32_0 : i32, i32
  }
  func.func @transform_7(%arg0: i32) -> (i32, i32) {
    %c0_i32 = arith.constant 0 : i32
    %c0_i32_0 = arith.constant 0 : i32
    %c0_i32_1 = arith.constant 0 : i32
    return %c0_i32, %c0_i32_0 : i32, i32
  }
}

</mosaic_0001>

<bundles_post_ra>
// kernel: multi_head_attention.1
= control target key start
LH: loop header
LB: loop body
LE: loop exit
PB: predicated region body
PF: predicated region fallthrough
CT: control target
= control target key end

     0   :  { %13 = vsyncpa [#allocation3], 0  ;;  %v1875_v2 = vmov 0   ;;  %vm239_vm0 = vcmask 261120   ;;  %s2382_s0 = inlined_call_operand.vmem [shape: f32[16,32], index: 0, kind: input, shape index: {}]   ;;  %s2383_s1 = inlined_call_operand.vmem [shape: f32[16,16], index: 1, kind: input, shape index: {}]   ;;  %s2384_s2 = inlined_call_operand.vmem [shape: bf16[32,1536], index: 2, kind: input, shape index: {}]   ;;  %s2385_s3 = inlined_call_operand.vmem [shape: f32[1,1536], index: 3, kind: input, shape index: {}]   ;;  %s2386_s4 = inlined_call_operand.vmem [shape: bf16[512,32], index: 4, kind: input, shape index: {}]   ;;  %s2387_s5 = inlined_call_operand.vmem [shape: f32[1,32], index: 5, kind: input, shape index: {}]   ;;  %s2388_s6 = inlined_call_operand.hbm [shape: f32[16,32], index: 6, kind: output, shape index: {0}]   ;;  %s2389_s7 = inlined_call_operand.hbm [shape: f32[16,32], index: 7, kind: output, shape index: {1}]  }
   0x1   :  { %v1727_v0 = vld [vmem:[%s2384_s2 + $0x4] ss:$48 sps:$4 sm:$0xff]   ;;  %v1729_v1 = vld [vmem:[%s2384_s2] ss:$48 sps:$4 sm:$0xff]   ;;  %275 = vmatprep.mubr.bf16.mxu0 %v1875_v2  ;;  %404 = vmatprep.mubr.bf16.mxu1 %v1875_v2  ;;  %v55_v6 = vld [vmem:[%s2382_s0 + $0x8] sm:$0xff] }
   0x2   :  { %243 = vmatprep.subr.bf16.mxu0 %v1727_v0  ;;  %v1730_v3 = vld [vmem:[%s2384_s2 + $0x64] ss:$48 sps:$4 sm:$0xff]   ;;  %v1732_v4 = vld [vmem:[%s2384_s2 + $0x60] ss:$48 sps:$4 sm:$0xff]   ;;  %v1735_v7 = vld [vmem:[%s2384_s2 + $0xc] ss:$48 sps:$4 sm:$0xff]  }
   0x3   :  { %v54_v5 = vld [vmem:[%s2382_s0] sm:$0xff]  ;;  %244 = vmatpush1.bf16.msra.mxu0 %v1729_v1  ;;  %v1733_v9 = vld [vmem:[%s2384_s2 + $0x8] ss:$48 sps:$4 sm:$0xff]   ;;  %v1738_v10 = vld [vmem:[%s2384_s2 + $0x6c] ss:$48 sps:$4 sm:$0xff]  }
   0x4   :  { %245 = vmatprep.subr.bf16.mxu0 %v1730_v3  ;;  %v56_v8 = vpack.c.bf16 %v55_v6, %v54_v5  ;;  %v1736_v11 = vld [vmem:[%s2384_s2 + $0x68] ss:$48 sps:$4 sm:$0xff]   ;;  %v1741_v12 = vld [vmem:[%s2384_s2 + $0x14] ss:$48 sps:$4 sm:$0xff]   ;;  %v1739_v13 = vld [vmem:[%s2384_s2 + $0x10] ss:$48 sps:$4 sm:$0xff]  }
   0x5   :  { %v1744_v14 = vld [vmem:[%s2384_s2 + $0x74] ss:$48 sps:$4 sm:$0xff]   ;;  %v1742_v15 = vld [vmem:[%s2384_s2 + $0x70] ss:$48 sps:$4 sm:$0xff]  }
   0x7   :  { %246 = vmatpush1.bf16.msra.mxu0 %v1732_v4 }
   0x8   :  { %286 = vmatprep.subr.bf16.mxu0 %v1735_v7 }
   0xa   :  { %1495 = vmatmul.mubr.msk.bf16.vlgmr.msra.gmra.mrb[0].mxu0 %vm239_vm0, %v56_v8 }
   0xb   :  { %287 = vmatpush1.bf16.msra.mxu0 %v1733_v9  ;;  %318 = vmatprep.mubr.bf16.mxu0 %v1875_v2 }
   0xc   :  { %288 = vmatprep.subr.bf16.mxu0 %v1738_v10 }
   0xf   :  { %289 = vmatpush1.bf16.msra.mxu0 %v1736_v11 }
  0x10   :  { %329 = vmatprep.subr.bf16.mxu0 %v1741_v12 }
  0x12   :  { %1496 = vmatmul.mubr.msk.bf16.vlgmr.msra.gmra.mrb[4].mxu0 %vm239_vm0, %v56_v8 }
  0x13   :  { %330 = vmatpush1.bf16.msra.mxu0 %v1739_v13  ;;  %361 = vmatprep.mubr.bf16.mxu0 %v1875_v2 }
  0x14   :  { %331 = vmatprep.subr.bf16.mxu0 %v1744_v14 }
  0x17   :  { %332 = vmatpush1.bf16.msra.mxu0 %v1742_v15 }
  0x1a   :  { %1497 = vmatmul.mubr.msk.bf16.vlgmr.msra.gmra.mrb[8].mxu0 %vm239_vm0, %v56_v8 }
  0x1b   :  { %447 = vmatprep.mubr.bf16.mxu0 %v1875_v2 }
  0x1c   :  { %14 = vsyncpa [#allocation5], 0  ;;  %v1747_v16 = vld [vmem:[%s2384_s2 + $0x24] ss:$48 sps:$4 sm:$0xff]   ;;  %v1745_v17 = vld [vmem:[%s2384_s2 + $0x20] ss:$48 sps:$4 sm:$0xff]   ;;  %v59_v29 = vlaneseq }
  0x1d   :  { %415 = vmatprep.subr.bf16.mxu0 %v1747_v16  ;;  %v1750_v18 = vld [vmem:[%s2384_s2 + $0x84] ss:$48 sps:$4 sm:$0xff]   ;;  %v1748_v19 = vld [vmem:[%s2384_s2 + $0x80] ss:$48 sps:$4 sm:$0xff]   ;;  %v1876_v20 = vmov 0.0   ;;  %vm1877_vm1 = vmmov 0  }
  0x1e   :  { %416 = vmatpush1.bf16.msra.mxu0 %v1745_v17  ;;  %v1751_v21 = vld [vmem:[%s2384_s2 + $0x1c] ss:$48 sps:$4 sm:$0xff]   ;;  %v1753_v22 = vld [vmem:[%s2384_s2 + $0x18] ss:$48 sps:$4 sm:$0xff]   ;;  %v2014_v30 = vshrl.u32 %v59_v29, 7  ;;  %v2020_v32 = vld [vmem:[%s2385_s3] sm:$0xff] }
  0x1f   :  { %417 = vmatprep.subr.bf16.mxu0 %v1750_v18  ;;  %v1754_v23 = vld [vmem:[%s2384_s2 + $0x7c] ss:$48 sps:$4 sm:$0xff]   ;;  %372 = vmatprep.subr.bf16.mxu1 %v1751_v21  ;;  %v1756_v24 = vld [vmem:[%s2384_s2 + $0x78] ss:$48 sps:$4 sm:$0xff]   ;;  %vm615_vm2 = vcmask 130048   ;;  %vm683_vm3 = vcmask 64512  }
  0x20   :  { %373 = vmatpush1.bf16.msra.mxu1 %v1753_v22  ;;  %v1759_v25 = vld [vmem:[%s2384_s2 + $0x2c] ss:$48 sps:$4 sm:$0xff]   ;;  %v1757_v26 = vld [vmem:[%s2384_s2 + $0x28] ss:$48 sps:$4 sm:$0xff]   ;;  %v61_v31 = vsub.s32 0, %v2014_v30  ;;  %v65_v33 = vsub.s32 1, %v2014_v30 }
  0x21   :  { %374 = vmatprep.subr.bf16.mxu1 %v1754_v23  ;;  %v1760_v27 = vld [vmem:[%s2384_s2 + $0x88] ss:$48 sps:$4 sm:$0xff]   ;;  %v1762_v28 = vld [vmem:[%s2384_s2 + $0x8c] ss:$48 sps:$4 sm:$0xff]   ;;  %v69_v42 = vsub.s32 2, %v2014_v30  ;;  %v73_v45 = vsub.s32 3, %v2014_v30 }
  0x22   :  { %418 = vmatpush1.bf16.msra.mxu0 %v1748_v19  ;;  %v62_v34 = vrot.slane %v2020_v32, %v61_v31  ;;  %v66_v36 = vrot.slane %v2020_v32, %v65_v33  ;;  %v77_v56 = vsub.s32 4, %v2014_v30  ;;  %v81_v59 = vsub.s32 5, %v2014_v30  ;;  %v2058_v10 = vld [vmem:[%s2385_s3 + $0x8] sm:$0xf]  ;;  %s1878_s2 = smov 8   ;;  %s1879_s30 = smov 16  }
  0x23   :  { %1590 = vmatprep.subr.bf16.mxu0 %v1876_v20  ;;  %v70_v48 = vrot.slane %v2020_v32, %v69_v42  ;;  %v74_v50 = vrot.slane %v2020_v32, %v73_v45  ;;  %v94_v11 = vrot.slane %v2058_v10, %v61_v31  ;;  %v98_v12 = vrot.slane %v2058_v10, %v65_v33  ;;  %v2077_v29 = vld [vmem:[%s2383_s1 + $0x8] sm:$0xff]  ;;  %s1880_s21 = smov 24   ;;  %s1881_s22 = smov [#allocation4]  }
  0x24   :  { %375 = vmatpush1.bf16.msra.mxu1 %v1756_v24  ;;  %v78_v62 = vrot.slane %v2020_v32, %v77_v56  ;;  %v82_v0 = vrot.slane %v2020_v32, %v81_v59  ;;  %vm810_vm4 = vcmask 130112   ;;  %vm1115_vm5 = vcmask 195712   ;;  %s1456_s23 = sshll.u32 %s1881_s22, 4  ;;  %s1457_s23 = int_to_ptr.vmem [resolvable:$true] %s1456_s23 }
  0x25   :  { %1499 = vmatmul.mubr.msk.bf16.vlgmr.msra.gmra.mrb[12].mxu0 %vm239_vm0, %v56_v8  ;;  %458 = vmatprep.subr.bf16.mxu1 %v1759_v25  ;;  %v2072_v25 = vld [vmem:[%s2383_s1] sm:$0xff]  ;;  %vm1333_vm6 = vcmask 261312   ;;  %s1827_s24 = scalar_lea.vmem %s1457_s23, 256  ;;  %p1832_p1 = scmp.lt.s32.totalorder %s1457_s23, %s1457_s23 }
  0x26   :  { %1592 = vmatprep.mubr.msk.bf16.mxu0 %vm1877_vm1, %v1876_v20  ;;  %p1828_p0 = scmp.ne.s32.totalorder %s1457_s23, %s1827_s24  ;;  %p1833_p2 = scmp.lt.s32.totalorder %s1827_s24, %s1827_s24 }
  0x27   :  { %1498 = vmatmul.mubr.msk.bf16.vlgmr.msra.gmra.mrb[0].mxu1 %vm239_vm0, %v56_v8 }
  0x28   :  { %459 = vmatpush1.bf16.msra.mxu1 %v1757_v26  ;;  %490 = vmatprep.mubr.bf16.mxu1 %v1875_v2  ;;  %p1834_p3 = por %p1833_p2, %p1832_p1 }
  0x29   :  { %460 = vmatprep.subr.bf16.mxu1 %v1762_v28 }
  0x2a   :  { %p1835_p4 = pnand %p1834_p3, %p1828_p0 }
  0x2c   :  { %461 = vmatpush1.bf16.msra.mxu1 %v1760_v27 }
  0x2d   :  { %1596 = vmatprep.subr.bf16.mxu1 %v1876_v20 }
  0x2f   :  { %1500 = vmatmul.mubr.msk.bf16.vlgmr.msra.gmra.mrb[4].mxu1 %vm239_vm0, %v56_v8 }
  0x30   :  { %1598 = vmatprep.mubr.msk.bf16.mxu1 %vm1877_vm1, %v1876_v20 }
  0xdd   :  { %v277_v35 = vpop.f32.mrb[0].mxu0 }
  0xde   :  { %v279_v37 = vpop.f32.mrb[1].mxu0  ;;  %v278_v39 = vadd.f32 %v277_v35, %v62_v34 }
  0xdf   :  { %v281_v38 = vpop.f32.mrb[2].mxu0  ;;  %v280_v43 = vadd.f32 %v279_v37, %v66_v36 }
  0xe0   :  { %v282_v40 = vadd.f32 %v281_v38, %v62_v34  ;;  %v283_v41 = vpop.f32.mrb[3].mxu0 }
  0xe1   :  { %v284_v44 = vadd.f32 %v283_v41, %v66_v36 }
  0xe2   :  { %v567_v46 = vpack.c.bf16 %v282_v40, %v278_v39 }
  0xe3   :  { %v687_v47 = vpack.c.bf16 %v284_v44, %v280_v43 }
  0xe5   :  { %v320_v49 = vpop.f32.mrb[4].mxu0 }
  0xe6   :  { %v322_v51 = vpop.f32.mrb[5].mxu0  ;;  %v2033_v53 = vadd.f32 %v320_v49, %v70_v48 }
  0xe7   :  { %v324_v52 = vpop.f32.mrb[6].mxu0  ;;  %v2038_v57 = vadd.f32 %v322_v51, %v74_v50 }
  0xe8   :  { %v2035_v54 = vadd.f32 %v324_v52, %v70_v48  ;;  %v326_v55 = vpop.f32.mrb[7].mxu0 }
  0xe9   :  { %v2040_v58 = vadd.f32 %v326_v55, %v74_v50 }
  0xea   :  { %v992_v60 = vpack.c.bf16 %v2035_v54, %v2033_v53 }
  0xeb   :  { %v1210_v61 = vpack.c.bf16 %v2040_v58, %v2038_v57 }
  0xed   :  { %v363_v63 = vpop.f32.mrb[8].mxu0 }
  0xee   :  { %v365_v1 = vpop.f32.mrb[9].mxu0  ;;  %v364_v3 = vadd.f32 %v363_v63, %v78_v62 }
  0xef   :  { %v367_v2 = vpop.f32.mrb[10].mxu0  ;;  %v366_v6 = vadd.f32 %v365_v1, %v82_v0 }
  0xf0   :  { %v368_v4 = vadd.f32 %v367_v2, %v78_v62  ;;  %v369_v5 = vpop.f32.mrb[11].mxu0 }
  0xf1   :  { %v370_v7 = vadd.f32 %v369_v5, %v82_v0 }
  0xf2   :  { %v568_v8 = vpack.c.bf16 %v368_v4, %v364_v3 }
  0xf3   :  { %v688_v9 = vpack.c.bf16 %v370_v7, %v366_v6 }
  0xf4   :  { %1591 = vmatpush3.bf16.xpose.msra.mxu0 %v568_v8 }
  0xf5   :  { %1602 = vmatprep.subr.bf16.mxu0 %v1876_v20 }
  0xf8   :  { %v449_v13 = vpop.f32.mrb[12].mxu0 }
  0xf9   :  { %v450_v14 = vadd.f32 %v449_v13, %v94_v11  ;;  %v451_v15 = vpop.f32.mrb[13].mxu0  ;;  %v1764_v13 = vld [vmem:[%s2386_s4 + $0x40] sm:$0xff]  }
  0xfa   :  { %v2062_v16 = vadd.f32 %v451_v15, %v98_v12  ;;  %v453_v17 = vpop.f32.mrb[14].mxu0  ;;  %v85_v15 = vsub.s32 6, %v2014_v30 }
  0xfb   :  { %1593 = vmatmul.mubr.bf16.vlgmr.msra.gmra.mrb[16].mxu0 %v567_v46  ;;  %v454_v18 = vadd.f32 %v453_v17, %v94_v11  ;;  %v455_v19 = vpop.f32.mrb[15].mxu0  ;;  %v406_v17 = vpop.f32.mrb[0].mxu1 }
  0xfc   :  { %1603 = vmatpush3.bf16.xpose.msra.mxu0 %v688_v9  ;;  %1604 = vmatprep.mubr.msk.bf16.mxu0 %vm1877_vm1, %v1876_v20  ;;  %v2064_v21 = vadd.f32 %v455_v19, %v98_v12  ;;  %v1768_v19 = vld [vmem:[%s2386_s4 + $0x50] sm:$0xff]  }
  0xfd   :  { %1614 = vmatprep.subr.bf16.mxu0 %v1876_v20  ;;  %v569_v22 = vpack.c.bf16 %v454_v18, %v450_v14  ;;  %v1766_v14 = vld [vmem:[%s2386_s4 + $0x48] sm:$0xff]   ;;  %v89_v18 = vsub.s32 7, %v2014_v30 }
  0xfe   :  { %v689_v23 = vpack.c.bf16 %v2064_v21, %v2062_v16  ;;  %v1774_v30 = vld [vmem:[%s2386_s4 + $0x68] sm:$0xff]   ;;  %v1767_v21 = vld [vmem:[%s2386_s4 + $0x10] sm:$0xff]  }
  0xff   :  { %1597 = vmatpush3.bf16.msra.mxu1 %v569_v22  ;;  %v408_v22 = vpop.f32.mrb[1].mxu1  ;;  %v1765_v16 = vld [vmem:[%s2386_s4 + $0x8] sm:$0xff]  }
 0x100   :  { %1608 = vmatprep.subr.bf16.mxu1 %v1876_v20 }
 0x103   :  { %1605 = vmatmul.mubr.bf16.vlgmr.msra.gmra.mrb[20].mxu0 %v687_v47 }
 0x104   :  { %1630 = vmatprep.mubr.msk.bf16.mxu0 %vm1877_vm1, %v1876_v20  ;;  %1615 = vmatpush3.bf16.msra.mxu0 %v1764_v13  ;;  %v1778_v13 = vld [vmem:[%s2386_s4 + $0x78] sm:$0xff]  }
 0x105   :  { %1616 = vmatprep.subr.bf16.mxu0 %v1876_v20 }
 0x108   :  { %1617 = vmatpush3.bf16.msra.mxu0 %v1766_v14 }
 0x109   :  { %1618 = vmatprep.subr.bf16.mxu0 %v1876_v20 }
 0x10c   :  { %1619 = vmatpush3.bf16.msra.mxu0 %v1768_v19 }
 0x10d   :  { %1620 = vmatprep.subr.bf16.mxu0 %v1876_v20 }
 0x1ce   :  { %v604_v24 = vpop.f32.mrb[16].mxu0 }
 0x1cf   :  { %v611_v26 = vmul.f32 0.35355338, %v604_v24  ;;  %v1594_v27 = vpop.f32.mrb[17].mxu0  ;;  %v86_v24 = vrot.slane %v2020_v32, %v85_v15 }
 0x1d0   :  { %v607_v28 = vpop.f32.mrb[18].mxu0  ;;  %v410_v27 = vpop.f32.mrb[2].mxu1 }
 0x1d1   :  { %v612_v31 = vmul.f32 0.35355338, %v607_v28  ;;  %v1595_v33 = vpop.f32.mrb[19].mxu0  ;;  %v613_v34 = vadd.f32 %v611_v26, %v2072_v25  ;;  %v90_v26 = vrot.slane %v2020_v32, %v89_v18  ;;  %v412_v28 = vpop.f32.mrb[3].mxu1 }
 0x1d3   :  { %v616_v35 = vsel %vm615_vm2, %v613_v34, -inf  ;;  %v614_v36 = vadd.f32 %v612_v31, %v2077_v29  ;;  %v2119_v31 = vadd.f32 %v406_v17, %v86_v24  ;;  %v2121_v33 = vadd.f32 %v408_v22, %v90_v26 }
 0x1d4   :  { %617 = vmax.xlane.f32.xlu0 %v616_v35  ;;  %v2125_v35 = vadd.f32 %v412_v28, %v90_v26 }
 0x1d5   :  { %v619_v40 = vsel %vm615_vm2, %v614_v36, -inf }
 0x1d6   :  { %v724_v37 = vpop.f32.mrb[20].mxu0 }
 0x1d7   :  { %v731_v38 = vmul.f32 0.35355338, %v724_v37  ;;  %v1606_v39 = vpop.f32.mrb[21].mxu0  ;;  %v1211_v37 = vpack.c.bf16 %v2125_v35, %v2121_v33  ;;  %v1786_v33 = vld [vmem:[%s2386_s4 + $0xb8] sm:$0xff]  }
 0x1d8   :  { %620 = vmax.xlane.f32.xlu0 %v619_v40  ;;  %v727_v41 = vpop.f32.mrb[22].mxu0  ;;  %v492_v39 = vpop.f32.mrb[4].mxu1  ;;  %v106_v40 = vrot.slane %v2058_v10, %v73_v45 }
 0x1d9   :  { %v732_v43 = vmul.f32 0.35355338, %v727_v41  ;;  %v1607_v44 = vpop.f32.mrb[23].mxu0  ;;  %v733_v46 = vadd.f32 %v731_v38, %v2072_v25  ;;  %v102_v38 = vrot.slane %v2058_v10, %v69_v42  ;;  %v1772_v41 = vld [vmem:[%s2386_s4 + $0x60] sm:$0xff]  }
 0x1db   :  { %v735_v47 = vsel %vm615_vm2, %v733_v46, -inf  ;;  %v734_v48 = vadd.f32 %v732_v43, %v2077_v29  ;;  %v494_v43 = vpop.f32.mrb[5].mxu1  ;;  %v2144_v44 = vadd.f32 %v492_v39, %v102_v38 }
 0x1dc   :  { %736 = vmax.xlane.f32.xlu1 %v735_v47  ;;  %v496_v47 = vpop.f32.mrb[6].mxu1 }
 0x1dd   :  { %v738_v49 = vsel %vm615_vm2, %v734_v48, -inf }
 0x1e0   :  { %739 = vmax.xlane.f32.xlu1 %v738_v49  ;;  %v498_v49 = vpop.f32.mrb[7].mxu1 }
 0x1e1   :  { %v2151_v42 = vadd.f32 %v498_v49, %v106_v40 }
 0x261   :  { %v618_v50 = vpop.xlane.xlu0 %617 }
 0x262   :  { %v622_v51 = vsub.f32 %v613_v34, %v618_v50  ;;  %v2123_v34 = vadd.f32 %v410_v27, %v86_v24 }
 0x264   :  { %v624_v52 = vmul.f32 1.442695, %v622_v51  ;;  %v993_v32 = vpack.c.bf16 %v2123_v34, %v2119_v31 }
 0x265   :  { %v621_v55 = vpop.xlane.xlu0 %620 }
 0x266   :  { %1795 = vpow2.f32 %v624_v52  ;;  %v623_v56 = vsub.f32 %v614_v36, %v621_v55  ;;  %v1770_v36 = vld [vmem:[%s2386_s4 + $0x58] sm:$0xff]  }
 0x267   :  { %1621 = vmatpush3.bf16.msra.mxu0 %v1770_v36 }
 0x268   :  { %v626_v59 = vmul.f32 1.442695, %v623_v56  ;;  %1622 = vmatprep.subr.bf16.mxu0 %v1876_v20 }
 0x269   :  { %v737_v62 = vpop.xlane.xlu1 %736 }
 0x26a   :  { %1797 = vpow2.f32 %v626_v59  ;;  %v741_v63 = vsub.f32 %v733_v46, %v737_v62  ;;  %v2146_v46 = vadd.f32 %v494_v43, %v106_v40 }
 0x26b   :  { %1623 = vmatpush3.bf16.msra.mxu0 %v1772_v41 }
 0x26c   :  { %v743_v0 = vmul.f32 1.442695, %v741_v63  ;;  %1624 = vmatprep.subr.bf16.mxu0 %v1876_v20  ;;  %v1212_v10 = vpack.c.bf16 %v2151_v42, %v2146_v46 }
 0x26d   :  { %v740_v1 = vpop.xlane.xlu1 %739 }
 0x26e   :  { %1799 = vpow2.f32 %v743_v0  ;;  %v742_v2 = vsub.f32 %v734_v48, %v740_v1  ;;  %v2148_v48 = vadd.f32 %v496_v47, %v102_v38 }
 0x26f   :  { %1625 = vmatpush3.bf16.msra.mxu0 %v1774_v30 }
 0x270   :  { %v2087_v3 = vpop.eup %1795  ;;  %v745_v4 = vmul.f32 1.442695, %v742_v2  ;;  %v994_v45 = vpack.c.bf16 %v2148_v48, %v2144_v44  ;;  %1626 = vmatprep.subr.bf16.mxu0 %v1876_v20 }
 0x271   :  { %v628_v5 = vsel %vm615_vm2, %v2087_v3, 0.0 }
 0x272   :  { %1801 = vpow2.f32 %v745_v4  ;;  %629 = vadd.xlane.f32.xlu0 %v628_v5  ;;  %v1763_v5 = vld [vmem:[%s2386_s4] sm:$0xff]  }
 0x274   :  { %v2091_v6 = vpop.eup %1797 }
 0x275   :  { %v631_v7 = vsel %vm615_vm2, %v2091_v6, 0.0 }
 0x276   :  { %632 = vadd.xlane.f32.xlu1 %v631_v7  ;;  %v1771_v7 = vld [vmem:[%s2386_s4 + $0x20] sm:$0xff]  }
 0x278   :  { %v2095_v8 = vpop.eup %1799 }
 0x279   :  { %v747_v9 = vsel %vm615_vm2, %v2095_v8, 0.0 }
 0x27a   :  { %748 = vadd.xlane.f32.xlu0 %v747_v9  ;;  %v1775_v9 = vld [vmem:[%s2386_s4 + $0x30] sm:$0xff]  }
 0x27c   :  { %v2099_v11 = vpop.eup %1801 }
 0x27d   :  { %v750_v12 = vsel %vm615_vm2, %v2099_v11, 0.0 }
 0x27e   :  { %751 = vadd.xlane.f32.xlu1 %v750_v12  ;;  %v1777_v12 = vld [vmem:[%s2386_s4 + $0x38] sm:$0xff]  }
 0x2ff   :  { %v630_v50 = vpop.xlane.xlu0 %629 }
 0x300   :  { %1803 = vrcp.f32 %v630_v50 }
 0x303   :  { %v633_v51 = vpop.xlane.xlu1 %632 }
 0x304   :  { %1805 = vrcp.f32 %v633_v51 }
 0x307   :  { %v749_v52 = vpop.xlane.xlu0 %748 }
 0x308   :  { %1807 = vrcp.f32 %v749_v52 }
 0x30a   :  { %v1804_v56 = vpop.eup %1803 }
 0x30b   :  { %v752_v55 = vpop.xlane.xlu1 %751  ;;  %v636_v62 = vmul.f32 %v1804_v56, %v2087_v3 }
 0x30c   :  { %1809 = vrcp.f32 %v752_v55 }
 0x30e   :  { %v1806_v59 = vpop.eup %1805 }
 0x30f   :  { %v637_v63 = vmul.f32 %v1806_v59, %v2091_v6 }
 0x311   :  { %v638_v0 = vpack.c.bf16 %v637_v63, %v636_v62 }
 0x312   :  { %v1808_v1 = vpop.eup %1807 }
 0x313   :  { %1599 = vmatmul.mubr.msk.bf16.vlgmr.msra.gmra.mrb[8].mxu1 %vm615_vm2, %v638_v0  ;;  %v755_v4 = vmul.f32 %v1808_v1, %v2095_v8  ;;  %v1773_v8 = vld [vmem:[%s2386_s4 + $0x28] sm:$0xff]  }
 0x314   :  { %1609 = vmatpush3.bf16.msra.mxu1 %v689_v23  ;;  %1610 = vmatprep.mubr.msk.bf16.mxu1 %vm1877_vm1, %v1876_v20  ;;  %v1769_v23 = vld [vmem:[%s2386_s4 + $0x18] sm:$0xff]  }
 0x315   :  { %1634 = vmatprep.subr.bf16.mxu1 %v1876_v20 }
 0x316   :  { %v1810_v2 = vpop.eup %1809 }
 0x317   :  { %v756_v3 = vmul.f32 %v1810_v2, %v2099_v11  ;;  %v1776_v11 = vld [vmem:[%s2386_s4 + $0x70] sm:$0xff]  }
 0x318   :  { %1627 = vmatpush3.bf16.msra.mxu0 %v1776_v11 }
 0x319   :  { %v757_v6 = vpack.c.bf16 %v756_v3, %v755_v4  ;;  %1628 = vmatprep.subr.bf16.mxu0 %v1876_v20  ;;  %v1779_v3 = vld [vmem:[%s2386_s4 + $0x80] sm:$0xff]  }
 0x31b   :  { %1611 = vmatmul.mubr.msk.bf16.vlgmr.msra.gmra.mrb[12].mxu1 %vm615_vm2, %v757_v6  ;;  %v1781_v6 = vld [vmem:[%s2386_s4 + $0x90] sm:$0xff]  }
 0x31c   :  { %1635 = vmatpush3.bf16.msra.mxu1 %v1763_v5  ;;  %1650 = vmatprep.mubr.msk.bf16.mxu1 %vm1877_vm1, %v1876_v20  ;;  %v1780_v5 = vld [vmem:[%s2386_s4 + $0x88] sm:$0xff]  }
 0x31d   :  { %1636 = vmatprep.subr.bf16.mxu1 %v1876_v20  ;;  %1629 = vmatpush3.bf16.msra.mxu0 %v1778_v13 }
 0x31e   :  { %1654 = vmatprep.subr.bf16.mxu0 %v1876_v20 }
 0x320   :  { %1637 = vmatpush3.bf16.msra.mxu1 %v1765_v16  ;;  %v1782_v16 = vld [vmem:[%s2386_s4 + $0x98] sm:$0xff]  }
 0x321   :  { %1638 = vmatprep.subr.bf16.mxu1 %v1876_v20 }
 0x324   :  { %1639 = vmatpush3.bf16.msra.mxu1 %v1767_v21  ;;  %v1783_v21 = vld [vmem:[%s2386_s4 + $0xa0] sm:$0xff]  }
 0x325   :  { %1640 = vmatprep.subr.bf16.mxu1 %v1876_v20 }
 0x328   :  { %1641 = vmatpush3.bf16.msra.mxu1 %v1769_v23  ;;  %v1784_v23 = vld [vmem:[%s2386_s4 + $0xa8] sm:$0xff]  }
 0x329   :  { %1642 = vmatprep.subr.bf16.mxu1 %v1876_v20 }
 0x32c   :  { %1643 = vmatpush3.bf16.msra.mxu1 %v1771_v7  ;;  %v1785_v7 = vld [vmem:[%s2386_s4 + $0xb0] sm:$0xff]  }
 0x32d   :  { %1644 = vmatprep.subr.bf16.mxu1 %v1876_v20 }
 0x330   :  { %1645 = vmatpush3.bf16.msra.mxu1 %v1773_v8 }
 0x331   :  { %1646 = vmatprep.subr.bf16.mxu1 %v1876_v20 }
 0x334   :  { %1647 = vmatpush3.bf16.msra.mxu1 %v1775_v9 }
 0x335   :  { %1648 = vmatprep.subr.bf16.mxu1 %v1876_v20 }
 0x338   :  { %1649 = vmatpush3.bf16.msra.mxu1 %v1777_v12 }
 0x339   :  { %1660 = vmatprep.subr.bf16.mxu1 %v1876_v20 }
 0x3e6   :  { %v676_v14 = vpop.f32.mrb[8].mxu1 }
 0x3e7   :  { %684 = vst.msk [vmem:[#allocation4] sm:$0xff] %vm683_vm3, %v676_v14  ;;  %v1600_v15 = vpop.f32.mrb[9].mxu1 }
 0x3e8   :  { %v679_v17 = vpop.f32.mrb[10].mxu1 }
 0x3e9   :  { %685 = vst.msk [vmem:[#allocation4 + $0x8] sm:$0xff] %vm683_vm3, %v679_v17  ;;  %v686_v18 = vpack.c.bf16 %v679_v17, %v676_v14  ;;  %v1601_v19 = vpop.f32.mrb[11].mxu1 }
 0x3eb   :  { %1651 = vmatmul.mubr.bf16.vlgmr.msra.gmra.mrb[16].mxu1 %v686_v18 }
 0x3ec   :  { %1661 = vmatpush3.bf16.msra.mxu1 %v994_v45  ;;  %1662 = vmatprep.mubr.msk.bf16.mxu1 %vm1877_vm1, %v1876_v20 }
 0x3ed   :  { %1686 = vmatprep.subr.bf16.mxu1 %v1876_v20 }
 0x3ee   :  { %v2221_v22 = vpop.f32.mrb[12].mxu1 }
 0x3ef   :  { %v1612_v24 = vpop.f32.mrb[13].mxu1 }
 0x3f0   :  { %v2223_v26 = vpop.f32.mrb[14].mxu1 }
 0x3f1   :  { %v813_v27 = vpack.c.bf16 %v2223_v26, %v2221_v22  ;;  %v1613_v28 = vpop.f32.mrb[15].mxu1 }
 0x3f3   :  { %1631 = vmatmul.mubr.bf16.vlgmr.msra.gmra.mrb[24].mxu0 %v813_v27 }
 0x3f4   :  { %1655 = vmatpush3.bf16.xpose.msra.mxu0 %v993_v32  ;;  %1656 = vmatprep.mubr.msk.bf16.mxu0 %vm1877_vm1, %v1876_v20 }
 0x3f5   :  { %1666 = vmatprep.subr.bf16.mxu0 %v1876_v20 }
 0x3fb   :  { %1657 = vmatmul.mubr.bf16.vlgmr.msra.gmra.mrb[28].mxu0 %v992_v60 }
 0x3fc   :  { %1682 = vmatprep.mubr.msk.bf16.mxu0 %vm1877_vm1, %v1876_v20  ;;  %1667 = vmatpush3.bf16.msra.mxu0 %v1779_v3  ;;  %v1793_v3 = vld [vmem:[%s2386_s4 + $0xf0] sm:$0xff]  }
 0x3fd   :  { %1668 = vmatprep.subr.bf16.mxu0 %v1876_v20 }
 0x400   :  { %1669 = vmatpush3.bf16.msra.mxu0 %v1780_v5  ;;  %v1794_v5 = vld [vmem:[%s2386_s4 + $0xf8] sm:$0xff]  }
 0x401   :  { %1670 = vmatprep.subr.bf16.mxu0 %v1876_v20 }
 0x404   :  { %1671 = vmatpush3.bf16.msra.mxu0 %v1781_v6 }
 0x405   :  { %1672 = vmatprep.subr.bf16.mxu0 %v1876_v20 }
 0x408   :  { %1673 = vmatpush3.bf16.msra.mxu0 %v1782_v16 }
 0x409   :  { %1674 = vmatprep.subr.bf16.mxu0 %v1876_v20 }
 0x40c   :  { %1675 = vmatpush3.bf16.msra.mxu0 %v1783_v21 }
 0x40d   :  { %1676 = vmatprep.subr.bf16.mxu0 %v1876_v20 }
 0x410   :  { %1677 = vmatpush3.bf16.msra.mxu0 %v1784_v23 }
 0x411   :  { %1678 = vmatprep.subr.bf16.mxu0 %v1876_v20 }
 0x414   :  { %1679 = vmatpush3.bf16.msra.mxu0 %v1785_v7 }
 0x415   :  { %1680 = vmatprep.subr.bf16.mxu0 %v1876_v20 }
 0x418   :  { %1681 = vmatpush3.bf16.msra.mxu0 %v1786_v33 }
 0x4be   :  { %v985_v36 = vpop.f32.mrb[16].mxu1 }
 0x4bf   :  { %v1652_v38 = vpop.f32.mrb[17].mxu1 }
 0x4c0   :  { %v988_v39 = vpop.f32.mrb[18].mxu1 }
 0x4c1   :  { %v1653_v40 = vpop.f32.mrb[19].mxu1 }
 0x4c6   :  { %v896_v41 = vpop.f32.mrb[24].mxu0 }
 0x4c7   :  { %v2238_v43 = vadd.f32 %v985_v36, %v896_v41  ;;  %v1632_v31 = vpop.f32.mrb[25].mxu0 }
 0x4c8   :  { %v899_v34 = vpop.f32.mrb[26].mxu0 }
 0x4c9   :  { %v2240_v32 = vadd.f32 %v988_v39, %v899_v34  ;;  %v1633_v44 = vpop.f32.mrb[27].mxu0 }
 0x4ce   :  { %v1029_v47 = vpop.f32.mrb[28].mxu0 }
 0x4cf   :  { %v1036_v48 = vmul.f32 0.35355338, %v1029_v47  ;;  %v1658_v49 = vpop.f32.mrb[29].mxu0 }
 0x4d0   :  { %v1032_v53 = vpop.f32.mrb[30].mxu0 }
 0x4d1   :  { %v1037_v54 = vmul.f32 0.35355338, %v1032_v53  ;;  %v1659_v60 = vpop.f32.mrb[31].mxu0  ;;  %v1038_v30 = vadd.f32 %v1036_v48, %v2072_v25 }
 0x4d3   :  { %v1040_v45 = vsel %vm615_vm2, %v1038_v30, -inf  ;;  %v1039_v50 = vadd.f32 %v1037_v54, %v2077_v29 }
 0x4d4   :  { %1041 = vmax.xlane.f32.xlu0 %v1040_v45 }
 0x4d5   :  { %v1043_v51 = vsel %vm615_vm2, %v1039_v50, -inf }
 0x4d6   :  { %1044 = vmax.xlane.f32.xlu1 %v1043_v51 }
 0x561   :  { %v1042_v52 = vpop.xlane.xlu0 %1041 }
 0x562   :  { %v1046_v55 = vsub.f32 %v1038_v30, %v1042_v52 }
 0x563   :  { %v1045_v56 = vpop.xlane.xlu1 %1044 }
 0x564   :  { %v1048_v59 = vmul.f32 1.442695, %v1046_v55  ;;  %v1047_v62 = vsub.f32 %v1039_v50, %v1045_v56 }
 0x566   :  { %1811 = vpow2.f32 %v1048_v59  ;;  %v1050_v63 = vmul.f32 1.442695, %v1047_v62 }
 0x568   :  { %1813 = vpow2.f32 %v1050_v63  ;;  %v1788_v63 = vld [vmem:[%s2386_s4 + $0xc8] sm:$0xff]  }
 0x570   :  { %v1812_v0 = vpop.eup %1811 }
 0x571   :  { %v1052_v1 = vsel %vm615_vm2, %v1812_v0, 0.0 }
 0x572   :  { %v1814_v2 = vpop.eup %1813  ;;  %1053 = vadd.xlane.f32.xlu0 %v1052_v1  ;;  %v1790_v1 = vld [vmem:[%s2386_s4 + $0xd8] sm:$0xff]  }
 0x573   :  { %v1055_v4 = vsel %vm615_vm2, %v1814_v2, 0.0 }
 0x574   :  { %1056 = vadd.xlane.f32.xlu1 %v1055_v4  ;;  %v1792_v4 = vld [vmem:[%s2386_s4 + $0xe8] sm:$0xff]  }
 0x5ff   :  { %v1054_v8 = vpop.xlane.xlu0 %1053 }
 0x600   :  { %1815 = vrcp.f32 %v1054_v8 }
 0x601   :  { %v1057_v9 = vpop.xlane.xlu1 %1056 }
 0x602   :  { %1817 = vrcp.f32 %v1057_v9 }
 0x60a   :  { %v1816_v11 = vpop.eup %1815 }
 0x60b   :  { %v1060_v13 = vmul.f32 %v1816_v11, %v1812_v0  ;;  %v1789_v0 = vld [vmem:[%s2386_s4 + $0xd0] sm:$0xff]  }
 0x60c   :  { %v1818_v12 = vpop.eup %1817 }
 0x60d   :  { %v1061_v14 = vmul.f32 %v1818_v12, %v1814_v2  ;;  %v1791_v2 = vld [vmem:[%s2386_s4 + $0xe0] sm:$0xff]  }
 0x60f   :  { %v1062_v15 = vpack.c.bf16 %v1061_v14, %v1060_v13 }
 0x611   :  { %1663 = vmatmul.mubr.msk.bf16.vlgmr.msra.gmra.mrb[20].mxu1 %vm615_vm2, %v1062_v15 }
 0x612   :  { %1687 = vmatpush3.bf16.xpose.msra.mxu1 %v1211_v37  ;;  %1688 = vmatprep.mubr.msk.bf16.mxu1 %vm1877_vm1, %v1876_v20 }
 0x613   :  { %1692 = vmatprep.subr.bf16.mxu1 %v1876_v20 }
 0x619   :  { %1689 = vmatmul.mubr.bf16.vlgmr.msra.gmra.mrb[24].mxu1 %v1210_v61 }
 0x61a   :  { %1693 = vmatpush3.bf16.msra.mxu1 %v1212_v10  ;;  %1694 = vmatprep.mubr.msk.bf16.mxu1 %vm1877_vm1, %v1876_v20 }
 0x61b   :  { %1698 = vmatprep.subr.bf16.mxu1 %v1876_v20 }
 0x6e4   :  { %v1100_v35 = vpop.f32.mrb[20].mxu1 }
 0x6e5   :  { %v1664_v37 = vpop.f32.mrb[21].mxu1 }
 0x6e6   :  { %v1103_v17 = vpop.f32.mrb[22].mxu1 }
 0x6e7   :  { %v1118_v18 = vpack.c.bf16 %v1103_v17, %v1100_v35  ;;  %v1665_v57 = vpop.f32.mrb[23].mxu1 }
 0x6e9   :  { %1683 = vmatmul.mubr.bf16.vlgmr.msra.gmra.mrb[32].mxu0 %v1118_v18 }
 0x6ec   :  { %v1247_v58 = vpop.f32.mrb[24].mxu1 }
 0x6ed   :  { %v1254_v61 = vmul.f32 0.35355338, %v1247_v58  ;;  %v1690_v46 = vpop.f32.mrb[25].mxu1 }
 0x6ee   :  { %v1250_v42 = vpop.f32.mrb[26].mxu1 }
 0x6ef   :  { %v1255_v10 = vmul.f32 0.35355338, %v1250_v42  ;;  %v1691_v19 = vpop.f32.mrb[27].mxu1  ;;  %v1256_v24 = vadd.f32 %v1254_v61, %v2072_v25 }
 0x6f1   :  { %v1258_v27 = vsel %vm615_vm2, %v1256_v24, -inf  ;;  %v1257_v28 = vadd.f32 %v1255_v10, %v2077_v29 }
 0x6f2   :  { %1259 = vmax.xlane.f32.xlu0 %v1258_v27 }
 0x6f3   :  { %v1261_v36 = vsel %vm615_vm2, %v1257_v28, -inf }
 0x6f4   :  { %1262 = vmax.xlane.f32.xlu1 %v1261_v36 }
 0x77f   :  { %v1260_v38 = vpop.xlane.xlu0 %1259 }
 0x780   :  { %v1264_v39 = vsub.f32 %v1256_v24, %v1260_v38 }
 0x781   :  { %v1263_v40 = vpop.xlane.xlu1 %1262 }
 0x782   :  { %v1266_v41 = vmul.f32 1.442695, %v1264_v39  ;;  %v1265_v31 = vsub.f32 %v1257_v28, %v1263_v40 }
 0x784   :  { %1819 = vpow2.f32 %v1266_v41  ;;  %v1268_v34 = vmul.f32 1.442695, %v1265_v31 }
 0x786   :  { %1821 = vpow2.f32 %v1268_v34 }
 0x78e   :  { %v1820_v44 = vpop.eup %1819 }
 0x78f   :  { %v1270_v47 = vsel %vm615_vm2, %v1820_v44, 0.0 }
 0x790   :  { %v1822_v25 = vpop.eup %1821  ;;  %1271 = vadd.xlane.f32.xlu0 %v1270_v47 }
 0x791   :  { %v1273_v48 = vsel %vm615_vm2, %v1822_v25, 0.0 }
 0x792   :  { %1274 = vadd.xlane.f32.xlu1 %v1273_v48 }
 0x7a3   :  { %806 = vrot.lane.b32.xlu1 %v2223_v26, %s1878_s2 }
 0x7a6   :  { %804 = vrot.lane.b32.xlu0 %v2221_v22, %s1878_s2 }
 0x7a7   :  { %1109 = vrot.lane.b32.xlu1 %v1100_v35, %s1879_s30 }
 0x7ab   :  { %1111 = vrot.lane.b32.xlu1 %v1103_v17, %s1879_s30 }
 0x7bc   :  { %v1201_v29 = vpop.f32.mrb[32].mxu0 }
 0x7bd   :  { %v2306_v49 = vadd.f32 %v1201_v29, %v2238_v43  ;;  %v1684_v53 = vpop.f32.mrb[33].mxu0 }
 0x7be   :  { %v1204_v54 = vpop.f32.mrb[34].mxu0 }
 0x7bf   :  { %v2309_v60 = vadd.f32 %v1204_v54, %v2240_v32  ;;  %v1685_v30 = vpop.f32.mrb[35].mxu0  ;;  %v1787_v32 = vld [vmem:[%s2386_s4 + $0xc0] sm:$0xff]  }
 0x81d   :  { %v1272_v45 = vpop.xlane.xlu0 %1271 }
 0x81e   :  { %1823 = vrcp.f32 %v1272_v45 }
 0x81f   :  { %v1275_v50 = vpop.xlane.xlu1 %1274 }
 0x820   :  { %1825 = vrcp.f32 %v1275_v50 }
 0x821   :  { %v805_v26 = vpop.permute.xlu0 %804 }
 0x822   :  { %811 = vst.msk [vmem:[#allocation4] sm:$0xff] %vm810_vm4, %v805_v26 }
 0x823   :  { %v807_v22 = vpop.permute.xlu1 %806 }
 0x824   :  { %812 = vst.msk [vmem:[#allocation4 + $0x8] sm:$0xff] %vm810_vm4, %v807_v22 }
 0x827   :  { %v1110_v51 = vpop.permute.xlu1 %1109 }
 0x828   :  { %v1824_v52 = vpop.eup %1823  ;;  %1116 = vst.msk [vmem:[#allocation4] sm:$0xff] %vm1115_vm5, %v1110_v51 }
 0x829   :  { %v1278_v55 = vmul.f32 %v1824_v52, %v1820_v44 }
 0x82a   :  { %v1826_v43 = vpop.eup %1825 }
 0x82b   :  { %v1279_v56 = vmul.f32 %v1826_v43, %v1822_v25  ;;  %v1112_v59 = vpop.permute.xlu1 %1111 }
 0x82c   :  { %1117 = vst.msk [vmem:[#allocation4 + $0x8] sm:$0xff] %vm1115_vm5, %v1112_v59 }
 0x82d   :  { %v1280_v62 = vpack.c.bf16 %v1279_v56, %v1278_v55 }
 0x82f   :  { %1695 = vmatmul.mubr.msk.bf16.vlgmr.msra.gmra.mrb[28].mxu1 %vm615_vm2, %v1280_v62 }
 0x830   :  { %1699 = vmatpush3.bf16.msra.mxu1 %v1787_v32  ;;  %1714 = vmatprep.mubr.msk.bf16.mxu1 %vm1877_vm1, %v1876_v20 }
 0x831   :  { %1700 = vmatprep.subr.bf16.mxu1 %v1876_v20 }
 0x834   :  { %1701 = vmatpush3.bf16.msra.mxu1 %v1788_v63 }
 0x835   :  { %1702 = vmatprep.subr.bf16.mxu1 %v1876_v20 }
 0x838   :  { %1703 = vmatpush3.bf16.msra.mxu1 %v1789_v0 }
 0x839   :  { %1704 = vmatprep.subr.bf16.mxu1 %v1876_v20 }
 0x83c   :  { %1705 = vmatpush3.bf16.msra.mxu1 %v1790_v1 }
 0x83d   :  { %1706 = vmatprep.subr.bf16.mxu1 %v1876_v20 }
 0x840   :  { %1707 = vmatpush3.bf16.msra.mxu1 %v1791_v2 }
 0x841   :  { %1708 = vmatprep.subr.bf16.mxu1 %v1876_v20 }
 0x844   :  { %1709 = vmatpush3.bf16.msra.mxu1 %v1792_v4 }
 0x845   :  { %1710 = vmatprep.subr.bf16.mxu1 %v1876_v20 }
 0x848   :  { %1711 = vmatpush3.bf16.msra.mxu1 %v1793_v3 }
 0x849   :  { %1712 = vmatprep.subr.bf16.mxu1 %v1876_v20 }
 0x84c   :  { %1713 = vmatpush3.bf16.msra.mxu1 %v1794_v5 }
 0x902   :  { %v1318_v6 = vpop.f32.mrb[28].mxu1 }
 0x903   :  { %1327 = vrot.lane.b32.xlu0 %v1318_v6, %s1880_s21  ;;  %v1696_v16 = vpop.f32.mrb[29].mxu1 }
 0x904   :  { %v1321_v21 = vpop.f32.mrb[30].mxu1 }
 0x905   :  { %v1336_v23 = vpack.c.bf16 %v1321_v21, %v1318_v6  ;;  %1329 = vrot.lane.b32.xlu1 %v1321_v21, %s1880_s21  ;;  %v1697_v7 = vpop.f32.mrb[31].mxu1 }
 0x907   :  { %1715 = vmatmul.mubr.bf16.vlgmr.msra.gmra.mrb[32].mxu1 %v1336_v23 }
 0x975   :  { %v1328_v8 = vpop.permute.xlu0 %1327 }
 0x976   :  { %1334 = vst.msk [vmem:[#allocation4] sm:$0xff] %vm1333_vm6, %v1328_v8 }
 0x977   :  { %v1330_v20 = vpop.permute.xlu1 %1329 }
 0x978   :  { %1335 = vst.msk [vmem:[#allocation4 + $0x8] sm:$0xff] %vm1333_vm6, %v1330_v20 }
 0x979   :  { %1838 = shalt.err (!%p1835_p4)
}
 0x97a   :  { %s1839_s26 = scalar_lea.hbm %s2389_s7, 256 }
 0x97b   :  { %p1840_p5 = scmp.ne.s32.totalorder %s2389_s7, %s1839_s26  ;;  %p1843_p6 = scmp.lt.u32.totalorder %s1839_s26, %s2389_s7 }
 0x97d   :  { %p1845_p7 = pnand %p1843_p6, %p1840_p5 }
 0x97f   :  { %1848 = shalt.err (!%p1845_p7)
}
 0x980   :  { %s1882_s3 = smov 128   ;;  %v1537_v11 = vld [vmem:[%s2387_s5] ss:$0 sm:$0xff]  ;;  %s1883_s11 = smov [#allocation2]  }
 0x981   :  { %1462 = dma.vmem_to_hbm [thread:$0]  %s1457_s23, 256, %s2389_s7, [#allocation5], %s1882_s3, %s1882_s3, %s1878_s2  }
 0x982   :  { %s1444_s12 = sshll.u32 %s1883_s11, 4  ;;  %s1445_s12 = int_to_ptr.vmem [resolvable:$true] %s1444_s12 }
 0x983   :  { %s1849_s7 = scalar_lea.vmem %s1445_s12, 256  ;;  %p1854_p9 = scmp.lt.s32.totalorder %s1445_s12, %s1445_s12 }
 0x984   :  { %p1850_p8 = scmp.ne.s32.totalorder %s1445_s12, %s1849_s7  ;;  %p1855_p10 = scmp.lt.s32.totalorder %s1849_s7, %s1849_s7 }
 0x986   :  { %p1856_p11 = por %p1855_p10, %p1854_p9 }
 0x988   :  { %p1857_p12 = pnand %p1856_p11, %p1850_p8 }
 0x9da   :  { %v1419_v9 = vpop.f32.mrb[32].mxu1 }
 0x9db   :  { %v1426_v12 = vadd.f32 %v1419_v9, %v2306_v49  ;;  %v1716_v13 = vpop.f32.mrb[33].mxu1 }
 0x9dc   :  { %v1422_v14 = vpop.f32.mrb[34].mxu1 }
 0x9dd   :  { %v1435_v15 = vadd.f32 %v1537_v11, %v1426_v12  ;;  %v1427_v33 = vadd.f32 %v1422_v14, %v2309_v60  ;;  %v1717_v35 = vpop.f32.mrb[35].mxu1 }
 0x9df   :  { %1437 = vst.msk [vmem:[#allocation2] sm:$0xff] %vm239_vm0, %v1435_v15  ;;  %v1436_v37 = vadd.f32 %v1537_v11, %v1427_v33 }
 0x9e1   :  { %1438 = vst.msk [vmem:[#allocation2 + $0x8] sm:$0xff] %vm239_vm0, %v1436_v37 }
 0x9e2   :  { %1860 = shalt.err (!%p1857_p12)
}
 0x9e3   :  { %s1861_s14 = scalar_lea.hbm %s2388_s6, 256 }
 0x9e4   :  { %p1862_p13 = scmp.ne.s32.totalorder %s2388_s6, %s1861_s14  ;;  %p1865_p0 = scmp.lt.u32.totalorder %s1861_s14, %s2388_s6 }
 0x9e6   :  { %p1867_p1 = pnand %p1865_p0, %p1862_p13 }
 0x9e8   :  { %1870 = shalt.err (!%p1867_p1)
}
 0x9e9   :  { %1450 = dma.vmem_to_hbm [thread:$0]  %s1445_s12, 256, %s2388_s6, [#allocation3], %s1882_s3, %s1882_s3, %s1878_s2  }
 0x9ea   :  { %1871 = dma.done.wait [#allocation3], 256  }
 0x9eb   :  { %1872 = vsyncadd [#allocation3], 4294967040 }
 0x9ec   :  { %1873 = dma.done.wait [#allocation5], 256  }
 0x9ed   :  { %1874 = vsyncadd [#allocation5], 4294967040 }
 0x9ee   :  { %1469 = vsyncpa [#allocation3], 1 }
 0x9ef   :  { %1470 = vsyncpa [#allocation5], 1 }

</bundles_post_ra>
